<compile_context>
chip_gen: v5e
topology: v5e:2x2
jax: 0.10.0
libtpu: 0.0.40
codegen_flags: <defaults>
</compile_context>

<pallas_src>
import functools

import jax
import jax.numpy as jnp
from jax.experimental import pallas as pl
from jax.experimental.pallas import tpu as pltpu

EPS = 1e-6


def _round_up(n, m):
    return ((n + m - 1) // m) * m


def _sublane_align(dtype):
    # dtype-native sublane packing: 8 rows for 4-byte, 16 for bf16, 32 for int8.
    return max(8, 32 // jnp.dtype(dtype).itemsize)


def _vmem_budget_bytes():
    # ~85% of physical per-core VMEM; conservative v7x default (64 MiB) if unknown.
    cap = 64 << 20
    try:
        info = pltpu.get_tpu_info()
        cap = int(getattr(info, "vmem_capacity_bytes", cap)) or cap
    except Exception:
        pass
    return int(cap * 0.85)


@functools.lru_cache(maxsize=None)
def _buffered_pipeline_supported():
    """One-time cached AOT-lowering probe: can constant operands be
    single-buffered via BlockSpec(pipeline_mode=pl.Buffered(1))?  Decided at
    trace time so the real kernel never needs a runtime try/except."""
    try:
        def _probe(x_ref, o_ref):
            o_ref[...] = x_ref[...] * 2.0

        probe = pl.pallas_call(
            _probe,
            out_shape=jax.ShapeDtypeStruct((8, 128), jnp.float32),
            grid=(1,),
            in_specs=[pl.BlockSpec((8, 128), lambda i: (0, 0),
                                   pipeline_mode=pl.Buffered(1))],
            out_specs=pl.BlockSpec((8, 128), lambda i: (0, 0)),
        )
        jax.jit(probe).lower(jax.ShapeDtypeStruct((8, 128), jnp.float32))
        return True
    except Exception:
        return False


def _estimate_vmem(row_tile, D, col_tile, xi, wi, w_bufs):
    """VMEM footprint estimate, including the f32 LayerNorm temporaries."""
    tiled = col_tile < D
    need = 2 * row_tile * D * xi                 # x row tile (double-buffered)
    need += 2 * row_tile * col_tile * xi         # output tile (double-buffered)
    if tiled:
        need += 2 * row_tile * col_tile * xi     # residual x column tile
        need += row_tile * D * wi                # normed(x) VMEM scratch
    need += w_bufs * D * col_tile * wi           # weight block(s)
    need += 3 * row_tile * D * 4                 # f32 LN temps (x32/centered/normed)
    need += row_tile * col_tile * 4              # f32 matmul accumulator
    need += 8 * D * 4 + 8 * col_tile * 4         # gamma/beta/bias (tiny)
    return need + (4 << 20)                      # compiler-internal headroom


def _default_col_tile(D, wi, budget, resident_w_bufs):
    # Fully-resident weight removes all repeated W HBM traffic -> prefer it when
    # it fits ~60% of the budget (v5e/v6e almost always; v7x large-D must stream).
    if resident_w_bufs * D * D * wi <= int(budget * 0.6):
        return D
    # Stream the weight in MXU-filling column blocks: prefer 512, then 256 for
    # the 256-wide MXU on v6e/v7x; 128 only if nothing larger divides D.
    for cand in (512, 256, 128):
        if cand < D and D % cand == 0:
            return cand
    return D  # D not lane-tileable; keep resident


def _default_row_tile(N, D, col_tile, xi, wi, w_bufs, align, budget):
    cap = _round_up(N, align)
    if N >= 2 * align:
        # Keep >= 2 row tiles so both v7x TensorCores get work on the parallel axis.
        cap = min(cap, _round_up(-(-N // 2), align))
    # Maximize the row tile: amortizes per-grid-step overhead and, when column
    # tiling, cuts weight HBM traffic which scales as (N/row_tile)*D^2.
    cands = sorted({max(align, min(_round_up(c, align), cap))
                    for c in (2048, 1024, 512, 256, 128, 64, 32, 16, 8)},
                   reverse=True)
    for rt in cands:
        if _estimate_vmem(rt, D, col_tile, xi, wi, w_bufs) <= budget:
            return rt
    return align


def _layernorm_f32(x, gamma, beta):
    """gamma * (x - mean) / (std + eps) + beta with unbiased std (ddof=1)."""
    x = x.astype(jnp.float32)
    d = x.shape[-1]
    mean = jnp.mean(x, axis=-1, keepdims=True)
    centered = x - mean
    var_unbiased = jnp.sum(centered * centered, axis=-1, keepdims=True) / (d - 1)
    inv = pl.reciprocal(jnp.sqrt(var_unbiased) + EPS, approx=True)   # EUP slot
    return centered * (gamma.astype(jnp.float32) * inv) + beta.astype(jnp.float32)


def _kernel_resident(x_ref, gamma_ref, beta_ref, w_ref, b_ref, o_ref):
    # Weight fully resident: 1-D grid over row tiles, full-width lane-dense output.
    normed = _layernorm_f32(x_ref[...], gamma_ref[...], beta_ref[...])
    sub = jnp.dot(normed.astype(w_ref.dtype), w_ref[...],
                  preferred_element_type=jnp.float32)
    sub = sub + b_ref[...].astype(jnp.float32)
    # dropout == identity (eval); residual added in f32, single downcast at the end.
    o_ref[...] = (x_ref[...].astype(jnp.float32) + sub).astype(o_ref.dtype)


def _kernel_tiled(x_full_ref, x_col_ref, gamma_ref, beta_ref, w_ref, b_ref,
                  o_ref, normed_ref):
    # Weight streamed in column blocks: grid = (row tiles, column blocks).
    # LayerNorm is computed once per row tile (j == 0) into a VMEM scratch held
    # in the matmul-LHS dtype and reused for every column block.
    @pl.when(pl.program_id(1) == 0)
    def _():
        normed = _layernorm_f32(x_full_ref[...], gamma_ref[...], beta_ref[...])
        normed_ref[...] = normed.astype(normed_ref.dtype)

    sub = jnp.dot(normed_ref[...], w_ref[...], preferred_element_type=jnp.float32)
    sub = sub + b_ref[...].astype(jnp.float32)
    o_ref[...] = (x_col_ref[...].astype(jnp.float32) + sub).astype(o_ref.dtype)


def sublayer_connection(x, gamma, beta, w, b, *, row_tile=None, col_tile=None):
    """out = x + Linear(LayerNorm(x)) (dropout = identity / eval mode).

    x: [B, S, D]; gamma/beta/b: [D]; w: [D, D].  Returns a lazy [B, S, D] array
    (no host sync), so it can be inlined into a jitted transformer stack.
    """
    B, S, D = x.shape
    assert D > 1, "unbiased std (ddof=1) needs D > 1"
    N = B * S
    xi = jnp.dtype(x.dtype).itemsize
    wi = jnp.dtype(w.dtype).itemsize
    align = max(_sublane_align(x.dtype), _sublane_align(w.dtype))
    budget = _vmem_budget_bytes()
    buffered_ok = _buffered_pipeline_supported()
    # Without Buffered(1) a resident weight would be double-buffered; letting the
    # selector see that pushes it to the column-tiled path instead of OOM-ing.
    resident_w_bufs = 1 if buffered_ok else 2

    if col_tile is None:
        col_tile = _default_col_tile(D, wi, budget, resident_w_bufs)
    assert D % col_tile == 0, "col_tile must divide D"
    assert col_tile == D or col_tile % 128 == 0, "col_tile must be lane-aligned (128)"
    tiled = col_tile < D
    w_bufs = 2 if tiled else resident_w_bufs

    if row_tile is None:
        row_tile = _default_row_tile(N, D, col_tile, xi, wi, w_bufs, align, budget)
    else:
        row_tile = max(align, min(_round_up(row_tile, align), _round_up(N, align)))

    n_rows = pl.cdiv(N, row_tile)
    vmem_limit = int(min(budget,
                         max(_estimate_vmem(row_tile, D, col_tile, xi, wi, w_bufs),
                             32 << 20)))

    x2 = x.reshape(N, D)
    gamma2 = gamma.reshape(1, D)
    beta2 = beta.reshape(1, D)
    b2 = b.reshape(1, D)

    const_kw = {"pipeline_mode": pl.Buffered(1)} if buffered_ok else {}

    if not tiled:
        grid = (n_rows,)
        in_specs = [
            pl.BlockSpec((row_tile, D), lambda i: (i, 0)),              # x
            pl.BlockSpec((1, D), lambda i: (0, 0), **const_kw),         # gamma
            pl.BlockSpec((1, D), lambda i: (0, 0), **const_kw),         # beta
            pl.BlockSpec((D, D), lambda i: (0, 0), **const_kw),         # w (resident)
            pl.BlockSpec((1, D), lambda i: (0, 0), **const_kw),         # bias
        ]
        out_specs = pl.BlockSpec((row_tile, D), lambda i: (i, 0))
        scratch = ()
        kernel = _kernel_resident
        args = (x2, gamma2, beta2, w, b2)
        dims = ("parallel",)
    else:
        ncol = D // col_tile
        grid = (n_rows, ncol)
        in_specs = [
            pl.BlockSpec((row_tile, D), lambda i, j: (i, 0)),           # x (LN input)
            pl.BlockSpec((row_tile, col_tile), lambda i, j: (i, j)),    # x (residual)
            pl.BlockSpec((1, D), lambda i, j: (0, 0), **const_kw),      # gamma
            pl.BlockSpec((1, D), lambda i, j: (0, 0), **const_kw),      # beta
            pl.BlockSpec((D, col_tile), lambda i, j: (0, j)),           # w column block
            pl.BlockSpec((1, col_tile), lambda i, j: (0, j)),           # bias column block
        ]
        out_specs = pl.BlockSpec((row_tile, col_tile), lambda i, j: (i, j))
        # LHS staged in the weight dtype: bf16 weights -> bf16 MXU fast path.
        scratch = (pltpu.VMEM((row_tile, D), w.dtype),)
        kernel = _kernel_tiled
        args = (x2, x2, gamma2, beta2, w, b2)
        dims = ("parallel", "arbitrary")

    out = pl.pallas_call(
        kernel,
        out_shape=jax.ShapeDtypeStruct((N, D), x.dtype),
        grid=grid,
        in_specs=in_specs,
        out_specs=out_specs,
        scratch_shapes=scratch,
        compiler_params=pltpu.CompilerParams(
            dimension_semantics=dims,
            vmem_limit_bytes=vmem_limit,
        ),
    )(*args)
    # Note: padded rows of a partial last row tile only feed their own (discarded)
    # output rows; LN/matmul on that padding cannot contaminate valid rows.
    return out.reshape(B, S, D)


def _reference(x, gamma, beta, w, b):
    x32 = x.astype(jnp.float32)
    mean = jnp.mean(x32, axis=-1, keepdims=True)
    var = jnp.sum((x32 - mean) ** 2, axis=-1, keepdims=True) / (x.shape[-1] - 1)
    std = jnp.sqrt(var)
    normed = (gamma.astype(jnp.float32) * (x32 - mean) / (std + EPS)
              + beta.astype(jnp.float32))
    sub = normed @ w.astype(jnp.float32) + b.astype(jnp.float32)
    return (x32 + sub).astype(x.dtype)


def _make_inputs(key, B, S, D, dtype):
    k1, k2, k3, k4, k5 = jax.random.split(key, 5)
    x = jax.random.normal(k1, (B, S, D), dtype=jnp.float32)
    gamma = 1.0 + 0.1 * jax.random.normal(k2, (D,), dtype=jnp.float32)
    beta = 0.1 * jax.random.normal(k3, (D,), dtype=jnp.float32)
    w = jax.random.normal(k4, (D, D), dtype=jnp.float32) / (D ** 0.5)
    b = 0.01 * jax.random.normal(k5, (D,), dtype=jnp.float32)
    return tuple(a.astype(dtype) for a in (x, gamma, beta, w, b))


if __name__ == "__main__":
    key = jax.random.PRNGKey(0)
    k1, k2, k3 = jax.random.split(key, 3)

    # ---- Test 1: f32, D=128, resident weight, 2 row tiles (megacore split) ----
    args1 = _make_inputs(k1, 2, 8, 128, jnp.float32)
    out1 = jax.block_until_ready(sublayer_connection(*args1))
    ref1 = _reference(*args1)
    assert out1.shape == (2, 8, 128)
    # approx=True EUP reciprocal -> not bit-exact against the f32 reference.
    assert jnp.allclose(out1, ref1, atol=1e-2, rtol=1e-2), \
        float(jnp.max(jnp.abs(out1 - ref1)))

    # ---- Test 2: f32, D=512, forced column-tiled weight (col_tile=256),
    #              ragged rows (N=18 not a row-tile multiple), under jax.jit ----
    args2 = _make_inputs(k2, 2, 9, 512, jnp.float32)
    fn2 = jax.jit(functools.partial(sublayer_connection, col_tile=256))
    out2 = jax.block_until_ready(fn2(*args2))
    ref2 = _reference(*args2)
    assert out2.shape == (2, 9, 512)
    assert jnp.allclose(out2, ref2, atol=1e-2, rtol=1e-2), \
        float(jnp.max(jnp.abs(out2 - ref2)))

    # ---- Test 3: bf16 fast path (bf16 LHS/RHS on the MXU, f32 accumulate) ----
    args3 = _make_inputs(k3, 2, 8, 256, jnp.bfloat16)
    out3 = jax.block_until_ready(sublayer_connection(*args3))
    ref3 = _reference(*args3)
    assert jnp.allclose(out3.astype(jnp.float32), ref3.astype(jnp.float32),
                        atol=7e-2, rtol=7e-2), \
        float(jnp.max(jnp.abs(out3.astype(jnp.float32) - ref3.astype(jnp.float32))))

    print("KERNEL_OK")
</pallas_src>

<mosaic_0001>
module attributes {stable_mosaic.version = 11 : i64} {
  func.func @_kernel_resident(%arg0: i32, %arg1: memref<8x128xf32, #tpu.memory_space<vmem>>, %arg2: memref<1x128xf32, #tpu.memory_space<vmem>>, %arg3: memref<1x128xf32, #tpu.memory_space<vmem>>, %arg4: memref<128x128xf32, #tpu.memory_space<vmem>>, %arg5: memref<1x128xf32, #tpu.memory_space<vmem>>, %arg6: memref<8x128xf32, #tpu.memory_space<vmem>>) attributes {dimension_semantics = [#tpu.dimension_semantics<parallel>], iteration_bounds = array<i64: 2>, scalar_prefetch = 0 : i64, scratch_operands = 0 : i64, tpu.core_type = #tpu.core_type<tc>, window_params = [{transform_indices = @transform_0, window_bounds = array<i64: 8, 128>}, {pipeline_mode = #tpu.pipeline_mode<synchronous>, transform_indices = @transform_1, window_bounds = array<i64: 1, 128>}, {pipeline_mode = #tpu.pipeline_mode<synchronous>, transform_indices = @transform_2, window_bounds = array<i64: 1, 128>}, {pipeline_mode = #tpu.pipeline_mode<synchronous>, transform_indices = @transform_3, window_bounds = array<i64: 128, 128>}, {pipeline_mode = #tpu.pipeline_mode<synchronous>, transform_indices = @transform_4, window_bounds = array<i64: 1, 128>}, {transform_indices = @transform_5, window_bounds = array<i64: 8, 128>}]} {
    %c0 = arith.constant 0 : index
    %c0_0 = arith.constant 0 : index
    %0 = vector.load %arg1[%c0, %c0_0] : memref<8x128xf32, #tpu.memory_space<vmem>>, vector<8x128xf32>
    %c0_1 = arith.constant 0 : index
    %c0_2 = arith.constant 0 : index
    %1 = vector.load %arg2[%c0_1, %c0_2] : memref<1x128xf32, #tpu.memory_space<vmem>>, vector<1x128xf32>
    %c0_3 = arith.constant 0 : index
    %c0_4 = arith.constant 0 : index
    %2 = vector.load %arg3[%c0_3, %c0_4] : memref<1x128xf32, #tpu.memory_space<vmem>>, vector<1x128xf32>
    %cst = arith.constant dense<0.000000e+00> : vector<8xf32>
    %3 = vector.multi_reduction <add>, %0, %cst [1] : vector<8x128xf32> to vector<8xf32>
    %4 = vector.shape_cast %3 : vector<8xf32> to vector<8x1xf32>
    %cst_5 = arith.constant 1.280000e+02 : f32
    %5 = vector.broadcast %cst_5 : f32 to vector<8x1xf32>
    %6 = arith.divf %4, %5 : vector<8x1xf32>
    %7 = vector.broadcast %6 : vector<8x1xf32> to vector<8x128xf32>
    %8 = arith.subf %0, %7 : vector<8x128xf32>
    %9 = arith.mulf %8, %8 : vector<8x128xf32>
    %cst_6 = arith.constant dense<0.000000e+00> : vector<8xf32>
    %10 = vector.multi_reduction <add>, %9, %cst_6 [1] : vector<8x128xf32> to vector<8xf32>
    %11 = vector.shape_cast %10 : vector<8xf32> to vector<8x1xf32>
    %cst_7 = arith.constant 1.270000e+02 : f32
    %12 = vector.broadcast %cst_7 : f32 to vector<8x1xf32>
    %13 = arith.divf %11, %12 : vector<8x1xf32>
    %14 = math.sqrt %13 : vector<8x1xf32>
    %cst_8 = arith.constant 9.99999997E-7 : f32
    %15 = vector.broadcast %cst_8 : f32 to vector<8x1xf32>
    %16 = arith.addf %14, %15 : vector<8x1xf32>
    %17 = tpu.reciprocal %16 {approx = true} : vector<8x1xf32> -> vector<8x1xf32>
    %18 = vector.broadcast %1 : vector<1x128xf32> to vector<8x128xf32>
    %19 = vector.broadcast %17 : vector<8x1xf32> to vector<8x128xf32>
    %20 = arith.mulf %18, %19 : vector<8x128xf32>
    %21 = arith.mulf %8, %20 : vector<8x128xf32>
    %22 = vector.broadcast %2 : vector<1x128xf32> to vector<8x128xf32>
    %23 = arith.addf %21, %22 : vector<8x128xf32>
    %c0_9 = arith.constant 0 : index
    %c0_10 = arith.constant 0 : index
    %24 = vector.load %arg4[%c0_9, %c0_10] : memref<128x128xf32, #tpu.memory_space<vmem>>, vector<128x128xf32>
    %cst_11 = arith.constant dense<0.000000e+00> : vector<8x128xf32>
    %25 = tpu.matmul %23, %24, %cst_11 {dimension_numbers = #tpu.dot_dimension_numbers<[1], [0], [0], [1], [0, 0, 1, 1], [], []>} : vector<8x128xf32>, vector<128x128xf32>, vector<8x128xf32> -> vector<8x128xf32>
    %c0_12 = arith.constant 0 : index
    %c0_13 = arith.constant 0 : index
    %26 = vector.load %arg5[%c0_12, %c0_13] : memref<1x128xf32, #tpu.memory_space<vmem>>, vector<1x128xf32>
    %27 = vector.broadcast %26 : vector<1x128xf32> to vector<8x128xf32>
    %28 = arith.addf %25, %27 : vector<8x128xf32>
    %c0_14 = arith.constant 0 : index
    %c0_15 = arith.constant 0 : index
    %29 = vector.load %arg1[%c0_14, %c0_15] : memref<8x128xf32, #tpu.memory_space<vmem>>, vector<8x128xf32>
    %30 = arith.addf %29, %28 : vector<8x128xf32>
    %c0_16 = arith.constant 0 : index
    %c0_17 = arith.constant 0 : index
    %31 = vector.load %arg6[%c0_16, %c0_17] : memref<8x128xf32, #tpu.memory_space<vmem>>, vector<8x128xf32>
    tpu.vector_store %arg6[%c0_16, %c0_17], %30 {strides = array<i32>} : memref<8x128xf32, #tpu.memory_space<vmem>>, vector<8x128xf32>,
    return
  }
  func.func @transform_0(%arg0: i32) -> (i32, i32) {
    %c0_i32 = arith.constant 0 : i32
    %c0_i32_0 = arith.constant 0 : i32
    return %arg0, %c0_i32 : i32, i32
  }
  func.func @transform_1(%arg0: i32) -> (i32, i32) {
    %c0_i32 = arith.constant 0 : i32
    %c0_i32_0 = arith.constant 0 : i32
    %c0_i32_1 = arith.constant 0 : i32
    return %c0_i32, %c0_i32_0 : i32, i32
  }
  func.func @transform_2(%arg0: i32) -> (i32, i32) {
    %c0_i32 = arith.constant 0 : i32
    %c0_i32_0 = arith.constant 0 : i32
    %c0_i32_1 = arith.constant 0 : i32
    return %c0_i32, %c0_i32_0 : i32, i32
  }
  func.func @transform_3(%arg0: i32) -> (i32, i32) {
    %c0_i32 = arith.constant 0 : i32
    %c0_i32_0 = arith.constant 0 : i32
    %c0_i32_1 = arith.constant 0 : i32
    return %c0_i32, %c0_i32_0 : i32, i32
  }
  func.func @transform_4(%arg0: i32) -> (i32, i32) {
    %c0_i32 = arith.constant 0 : i32
    %c0_i32_0 = arith.constant 0 : i32
    %c0_i32_1 = arith.constant 0 : i32
    return %c0_i32, %c0_i32_0 : i32, i32
  }
  func.func @transform_5(%arg0: i32) -> (i32, i32) {
    %c0_i32 = arith.constant 0 : i32
    %c0_i32_0 = arith.constant 0 : i32
    return %arg0, %c0_i32 : i32, i32
  }
}

</mosaic_0001>

<bundles_post_ra>
// kernel: tpu_custom_call.1
= control target key start
LH: loop header
LB: loop body
LE: loop exit
PB: predicated region body
PF: predicated region fallthrough
CT: control target
= control target key end

     0   :  { %10 = vsyncpa [#allocation3], 0  ;;  %s925_s0 = inlined_call_operand.hbm [shape: f32[16,128], index: 0, kind: input, shape index: {}]   ;;  %s926_s1 = inlined_call_operand.hbm [shape: f32[1,128], index: 1, kind: input, shape index: {}]   ;;  %s927_s2 = inlined_call_operand.vmem [shape: f32[1,128], index: 2, kind: input, shape index: {}]   ;;  %s928_s3 = inlined_call_operand.hbm [shape: f32[128,128], index: 3, kind: input, shape index: {}]   ;;  %s929_s4 = inlined_call_operand.vmem [shape: f32[1,128], index: 4, kind: input, shape index: {}]   ;;  %s930_s5 = inlined_call_operand.hbm [shape: f32[16,128], index: 5, kind: output, shape index: {}]  }
   0x1   :  { %12 = vsyncpa [#allocation3 + $0x1], 0 }
   0x2   :  { %13 = vsyncpa [#allocation6], 0 }
   0x3   :  { %14 = vsyncpa [#allocation4], 0 }
   0x4   :  { %16 = vsyncpa [#allocation4 + $0x1], 0  ;;  %s764_s18 = smov 0   ;;  %s766_s19 = smov 0  }
   0x5   :  { %s768_s20 = smov 0   ;;  %s770_s21 = smov 0  }
   0x6 LB: > { %s785_s22 = sadd.s32 4294967295, %s726_s21   ;;  %s468_s23 = sadd.s32 4294967294, %s726_s21   ;;  %s726_s21 = sphi %s770_s21, %s940_s21   ;;  %s722_s20 = sphi %s768_s20, %s939_s20   ;;  %s718_s19 = sphi %s766_s19, %s938_s19   ;;  %s714_s18 = sphi %s764_s18, %s937_s18  }
   0x7   : > { %p42_p0 = scmp.ne.s32.totalorder %s718_s19, %s714_s18  ;;  %p43_p1 = scmp.eq.s32.totalorder %s785_s22, 0 }
   0x8   : > { %p150_p2 = scmp.eq.s32.totalorder %s785_s22, 1  ;;  %p156_p3 = scmp.eq.s32.totalorder %s468_s23, 1 }
   0x9   : > { %p794_p4 = por %p43_p1, %p42_p0  ;;  %p469_p5 = scmp.ge.s32.totalorder %s726_s21, 1 }
   0xa   : > { %p799_p6 = por %p156_p3, %p42_p0  ;;  %p163_p7 = scmp.lt.s32.totalorder %s726_s21, 3 }
   0xb   : > { %s175_s28 = sshll.u32 %s926_s1, 4  ;;  %s728_s30 = smov [#allocation5]   ;;  %s176_s28 = int_to_ptr.hbm [resolvable:$true] %s175_s28 }
   0xc   : > { %p807_p8 = pnand %p469_p5, %p163_p7  ;;  %s177_s6 = sshll.u32 %s728_s30, 4  ;;  %s178_s6 = int_to_ptr.vmem [resolvable:$true] %s177_s6 }
   0xd   : > { %s189_s9 = sshll.u32 %s928_s3, 4  ;;  %s729_s10 = smov [#allocation7]   ;;  %s190_s9 = int_to_ptr.hbm [resolvable:$true] %s189_s9 }
   0xe   : > { %p496_p10 = pneg %p807_p8  ;;  %s191_s11 = sshll.u32 %s729_s10, 4  ;;  %s192_s11 = int_to_ptr.vmem [resolvable:$true] %s191_s11 }
   0xf   : > { %s730_s12 = smov 128   ;;  %s731_s13 = smov 8  }
  0x10   : > { %p497_p11 = pnand %p496_p10, %p43_p1  ;;  %s820_s14 = sadd.s32 1, %s726_s21  }
  0x11   : > { %s26_s15 = ssub.s32 %s726_s21, %s820_s14  ;;  %s29_s16 = sadd.s32 1, %s722_s20 }
  0x12   : > { %499 = dma.hbm_to_vmem [thread:$0]  (!%p497_p11), %s176_s28, 16, %s178_s6, [#allocation6]  }
  0x13   : > { %502 = dma.hbm_to_vmem [thread:$0]  (!%p497_p11), %s190_s9, 2048, %s192_s11, [#allocation6], %s730_s12, %s730_s12, %s731_s13  }
  0x14   : > { %p27_p12 = scmp.eq.s32.totalorder %s26_s15, 0  ;;  %p36_p13 = scmp.ne.s32.totalorder %s722_s20, %s718_s19 }
  0x15   : > { %p37_p0 = scmp.eq.s32.totalorder %s726_s21, 0  ;;  %p513_p7 = scmp.lt.s32.totalorder %s726_s21, 2 }
  0x16   : > { %s829_s17 = scalar_select %p27_p12, %s722_s20, %s29_s16  }
  0x17   : > { %p38_p3 = por %p37_p0, %p36_p13  ;;  %p833_p5 = por %p150_p2, %p36_p13 }
  0x18   : > { %s208_s26 = sand.u32 1, %s722_s20   ;;  %s474_s28 = sshll.u32 %s726_s21, 3 }
  0x19   : > { %s473_s27 = sshll.u32 %s208_s26, 3  ;;  %s216_s7 = scalar_lea.hbm %s925_s0, %s474_s28 }
  0x1a   : > { %s212_s8 = scalar_lea.vmem [#allocation2], %s473_s27  ;;  %s218_s10 = sshll.u32 %s216_s7, 4  ;;  %s219_s10 = int_to_ptr.hbm [resolvable:$true] %s218_s10 }
  0x1b   : > { %s220_s9 = sshll.u32 %s212_s8, 4  ;;  %p843_p10 = pnand %p513_p7, %p38_p3  ;;  %s221_s9 = int_to_ptr.vmem [resolvable:$true] %s220_s9 }
  0x1c   : > { %s209_s12 = scalar_lea.sflag [#allocation3], %s208_s26  ;;  %s626_s13 = sshra.s32 %s219_s10, 4  ;;  %s627_s13 = int_to_ptr.hbm [resolvable:$true] %s626_s13 }
  0x1d   : > { %s628_s15 = scalar_lea.hbm %s627_s13, 8  ;;  %p630_p11 = pneg %p843_p10 }
  0x1e   : > { %p629_p2 = scmp.ne.s32.totalorder %s627_s13, %s628_s15  ;;  %s633_s28 = scalar_lea.hbm %s925_s0, 16 }
  0x1f   : > { %p634_p0 = scmp.lt.s32.totalorder %s627_s13, %s925_s0  ;;  %p635_p3 = scmp.lt.s32.totalorder %s633_s28, %s628_s15 }
  0x20   : > { %p631_p12 = pnand %p630_p11, %p629_p2 }
  0x21   : > { %p636_p7 = por %p635_p3, %p634_p0 }
  0x22   : > { %p632_p13 = pneg %p631_p12 }
  0x24   : > { %p637_p9 = pnand %p636_p7, %p632_p13 }
  0x26   : > { %640 = shalt.err (!%p637_p9)
}
  0x27   : > { %506 = dma.hbm_to_vmem [thread:$0]  (!%p843_p10), %s219_s10, 128, %s221_s9, %s209_s12  }
  0x28   : > { %229 = sbr.rel (%p807_p8) target bundleno = 458 (0x1ca), region = 40  ;;  %s860_s26 = sand.u32 (!%p807_p8), 1, %s718_s19  }
  0x29   : > { %s476_s7 = sshll.u32 (!%p807_p8), %s860_s26, 3  ;;  %s232_s8 = scalar_lea.sflag (!%p807_p8), [#allocation3], %s860_s26 }
  0x2a   : > { %s235_s13 = scalar_lea.vmem (!%p807_p8), [#allocation2], %s476_s7 }
  0x2d   : > { %701 = dma.done.wait (%p794_p4), %s232_s8, 128  }
  0x2e   : > { %703 = vsyncadd (%p794_p4), %s232_s8, 4294967168 }
  0x2f   : > { %705 = dma.done.wait (%p43_p1), [#allocation6], 2064  }
  0x30   : > { %707 = vsyncadd (%p43_p1), [#allocation6], 4294965232  ;;  %v874_v0 = vld [vmem:[%s235_s13] sm:$0xff]  ;;  %v732_v1 = vmov 128.0   ;;  %v733_v12 = vmov 127.0   ;;  %v333_v17 = vld [vmem:[#allocation7 + $0x60] sm:$0xff] }
  0x31   : > { %276 = vadd.xlane.f32.xlu0 %v874_v0  ;;  %558 = vrcp.f32 %v732_v1  ;;  %v336_v13 = vld [vmem:[#allocation7 + $0x78] sm:$0xff]  ;;  %v335_v14 = vld [vmem:[#allocation7 + $0x70] sm:$0xff]  ;;  %v334_v15 = vld [vmem:[#allocation7 + $0x68] sm:$0xff]  ;;  %s481_s9 = sshll.u32 %s785_s22, 3  ;;  %s272_s27 = scalar_lea.vmem [#allocation8], %s476_s7 }
  0x32   : > { %560 = vrcp.f32 %v733_v12  ;;  %341 = vmatpush.msra.mxu0 %v336_v13  ;;  %v332_v18 = vld [vmem:[#allocation7 + $0x58] sm:$0xff]  ;;  %v331_v20 = vld [vmem:[#allocation7 + $0x50] sm:$0xff]  ;;  %v330_v21 = vld [vmem:[#allocation7 + $0x48] sm:$0xff]  ;;  %s374_s16 = scalar_lea.hbm %s930_s5, %s481_s9  ;;  %s376_s28 = sshll.u32 %s272_s27, 4  ;;  %s377_s28 = int_to_ptr.vmem [resolvable:$true] %s376_s28 }
  0x33   : > { %v329_v23 = vld [vmem:[#allocation7 + $0x40] sm:$0xff]  ;;  %v328_v24 = vld [vmem:[#allocation7 + $0x38] sm:$0xff]  ;;  %v327_v26 = vld [vmem:[#allocation7 + $0x30] sm:$0xff]  ;;  %s378_s30 = sshll.u32 %s374_s16, 4  ;;  %s364_s22 = scalar_lea.sflag [#allocation4], %s860_s26  ;;  %s379_s30 = int_to_ptr.hbm [resolvable:$true] %s378_s30 }
  0x34   : > { %342 = vmatpush.msra.mxu0 %v335_v14  ;;  %v326_v27 = vld [vmem:[#allocation7 + $0x28] sm:$0xff]  ;;  %v325_v29 = vld [vmem:[#allocation7 + $0x20] sm:$0xff]  ;;  %v324_v30 = vld [vmem:[#allocation7 + $0x18] sm:$0xff]  ;;  %s670_s6 = sshra.s32 %s379_s30, 4  ;;  %s676_s7 = scalar_lea.hbm %s930_s5, 16  ;;  %s671_s6 = int_to_ptr.hbm [resolvable:$true] %s670_s6 }
  0x35   : > { %v323_v32 = vld [vmem:[#allocation7 + $0x10] sm:$0xff]  ;;  %v322_v35 = vld [vmem:[#allocation7 + $0x8] sm:$0xff]  ;;  %v321_v36 = vld [vmem:[#allocation7] sm:$0xff]  ;;  %s672_s8 = scalar_lea.hbm %s671_s6, 8  ;;  %p677_p9 = scmp.lt.s32.totalorder %s671_s6, %s930_s5 }
  0x36   : > { %343 = vmatpush.msra.mxu0 %v334_v15  ;;  %v555_v48 = vld [vmem:[#allocation5] ss:$0 sm:$0xff]  ;;  %v556_v51 = vld [vmem:[%s927_s2] ss:$0 sm:$0xff]  ;;  %p673_p1 = scmp.ne.s32.totalorder %s671_s6, %s672_s8  ;;  %p678_p10 = scmp.lt.s32.totalorder %s676_s7, %s672_s8 }
  0x37   : > { %v559_v2 = vpop.eup %558  ;;  %v557_v54 = vld [vmem:[%s929_s4] ss:$0 sm:$0xff] }
  0x38   : > { %v279_v3 = vmul.f32 128.0, %v559_v2  ;;  %vm283_vm0 = vweird.f32 %v559_v2  ;;  %v561_v16 = vpop.eup %560  ;;  %344 = vmatpush.msra.mxu0 %v333_v17  ;;  %p674_p4 = pnand %p673_p1, %p833_p5  ;;  %p679_p2 = por %p678_p10, %p677_p9 }
  0x39   : > { %v291_v19 = vmul.f32 127.0, %v561_v16  ;;  %vm295_vm1 = vweird.f32 %v561_v16 }
  0x3a   : > { %v280_v4 = vsub.f32 1.0, %v279_v3  ;;  %345 = vmatpush.msra.mxu0 %v332_v18  ;;  %p675_p8 = pneg %p674_p4 }
  0x3b   : > { %v292_v22 = vsub.f32 1.0, %v291_v19 }
  0x3c   : > { %v281_v5 = vmul.f32 %v559_v2, %v280_v4  ;;  %346 = vmatpush.msra.mxu0 %v331_v20  ;;  %p680_p11 = pnand %p679_p2, %p675_p8 }
  0x3d   : > { %v293_v25 = vmul.f32 %v561_v16, %v292_v22 }
  0x3e   : > { %v282_v6 = vadd.f32 %v559_v2, %v281_v5  ;;  %347 = vmatpush.msra.mxu0 %v330_v21 }
  0x3f   : > { %v294_v28 = vadd.f32 %v561_v16, %v293_v25 }
  0x40   : > { %v284_v7 = vsel %vm283_vm0, %v559_v2, %v282_v6  ;;  %348 = vmatpush.msra.mxu0 %v329_v23 }
  0x41   : > { %v296_v31 = vsel %vm295_vm1, %v561_v16, %v294_v28 }
  0x42   : > { %349 = vmatpush.msra.mxu0 %v328_v24 }
  0x44   : > { %350 = vmatpush.msra.mxu0 %v327_v26 }
  0x46   : > { %351 = vmatpush.msra.mxu0 %v326_v27 }
  0x48   : > { %352 = vmatpush.msra.mxu0 %v325_v29 }
  0x4a   : > { %353 = vmatpush.msra.mxu0 %v324_v30 }
  0x4c   : > { %354 = vmatpush.msra.mxu0 %v323_v32 }
  0x4e   : > { %355 = vmatpush.msra.mxu0 %v322_v35 }
  0x50   : > { %356 = vmatpush.msra.mxu0 %v321_v36 }
  0xa4   : > { %v277_v8 = vpop.xlane.xlu0 %276 }
  0xa5   : > { %v285_v9 = vmul.f32 %v284_v7, %v277_v8 }
  0xa7   : > { %v878_v10 = vsub.f32 %v874_v0, %v285_v9 }
  0xa9   : > { %v287_v11 = vmul.f32 %v878_v10, %v878_v10 }
  0xab   : > { %288 = vadd.xlane.f32.xlu0 %v287_v11 }
 0x11e   : > { %v289_v33 = vpop.xlane.xlu0 %288 }
 0x11f   : > { %v297_v34 = vmul.f32 %v296_v31, %v289_v33 }
 0x121   : > { %562 = vrsqrt.f32 %v297_v34  ;;  %vm305_vm2 = vcmp.eq.f32.partialorder %v297_v34, inf  ;;  %v308_v44 = vand.u32 2147483648, %v297_v34  ;;  %vm307_vm3 = vcmp.eq.f32.partialorder %v297_v34, 0.0 }
 0x127   : > { %v563_v37 = vpop.eup %562 }
 0x128   : > { %v299_v38 = vmul.f32 %v563_v37, %v297_v34 }
 0x12a   : > { %v300_v39 = vmul.f32 %v563_v37, %v299_v38 }
 0x12c   : > { %v301_v40 = vmul.f32 0.5, %v300_v39 }
 0x12e   : > { %v302_v41 = vsub.f32 1.5, %v301_v40 }
 0x130   : > { %v303_v42 = vmul.f32 %v563_v37, %v302_v41 }
 0x132   : > { %v304_v43 = vmul.f32 %v303_v42, %v297_v34 }
 0x134   : > { %v306_v45 = vsel %vm305_vm2, %v297_v34, %v304_v43 }
 0x135   : > { %v309_v46 = vsel %vm307_vm3, %v308_v44, %v306_v45 }
 0x136   : > { %v310_v47 = vadd.f32 1e-06, %v309_v46 }
 0x138   : > { %564 = vrcp.f32 %v310_v47 }
 0x13e   : > { %v565_v49 = vpop.eup %564 }
 0x13f   : > { %v315_v50 = vmul.f32 %v565_v49, %v555_v48 }
 0x141   : > { %v316_v52 = vmul.f32 %v315_v50, %v878_v10 }
 0x143   : > { %v320_v53 = vadd.f32 %v556_v51, %v316_v52 }
 0x145   : > { %357 = vmatmul.f32.vlgmr.msra.gmra.mxu0 %v320_v53 }
 0x1c2   : > { %v358_v55 = vpop.f32.mrf.mxu0 }
 0x1c3   : > { %v359_v56 = vadd.f32 %v557_v54, %v358_v55 }
 0x1c5   : > { %v361_v57 = vadd.f32 %v359_v56, %v874_v0 }
 0x1c7   : > { %362 = vst [vmem:[%s272_s27] sm:$0xff] %v361_v57 }
 0x1c8   : > { %683 = shalt.err (!%p680_p11)
}
 0x1c9   : > { %494 = dma.vmem_to_hbm [thread:$0]  (%p833_p5), %s377_s28, 128, %s379_s30, %s364_s22  }
 0x1ca PF: > { %s390_s26 = sand.u32 1, %s714_s18   ;;  %p936_p12 = scmp.ge.s32.totalorder %s726_s21, 2 }
 0x1cb   : > { %s391_s10 = scalar_lea.sflag [#allocation4], %s390_s26 }
 0x1cc   : > { %p508_p13 = pnand %p936_p12, %p799_p6 }
 0x1ce   : > { %p509_p0 = pneg %p508_p13 }
 0x1d0   : > { %709 = dma.done.wait (%p509_p0), %s391_s10, 128  }
 0x1d1   : > { %711 = vsyncadd (%p509_p0), %s391_s10, 4294967168  ;;  %p19_p3 = scmp.ge.s32.totalorder %s820_s14, 4   ;;  %s937_s18 = smov %s718_s19 }
 0x1d2   : > { %s938_s19 = smov %s722_s20  ;;  %s939_s20 = smov %s829_s17 }
 0x1d3   : > { %s940_s21 = smov %s820_s14  ;;  %21 = sbr.rel (!%p19_p3) target bundleno = 6 (0x6), region = 93 }
 0x1d8   :  { %397 = vsyncpa [#allocation3], 1 }
 0x1d9   :  { %399 = vsyncpa [#allocation3 + $0x1], 1 }
 0x1da   :  { %400 = vsyncpa [#allocation6], 1 }
 0x1db   :  { %401 = vsyncpa [#allocation4], 1 }
 0x1dc   :  { %403 = vsyncpa [#allocation4 + $0x1], 1 }

</bundles_post_ra>
